<compile_context>
chip_gen: v7x
topology: tpu7x:2x2x1
jax: 0.10.0
libtpu: 0.0.40
codegen_flags: <defaults>
</compile_context>

<pallas_src>
import jax
import jax.numpy as jnp
from jax.experimental import pallas as pl
from jax.experimental.pallas import tpu as pltpu


def _round_up(x, m):
    return (x + m - 1) // m * m


def _cdiv(a, b):
    return -(-a // b)


def _pick_hidden_chunk(Hp, cap):
    """Largest multiple-of-128 divisor of Hp that is <= cap (Hp is a multiple of 128)."""
    cap = min(cap, Hp)
    for c in range(cap // 128 * 128, 0, -128):
        if Hp % c == 0:
            return c
    return Hp


def moe_expert_kernel(g_ref, x_ref, w1_ref, b1_ref, w2_ref, b2_ref,
                      w3_ref, b3_ref, o_ref, acc_ref, h1_ref):
    """Grid = (batch_tiles, experts, hidden_chunks); out/acc resident across (e, c)."""
    e = pl.program_id(1)
    c = pl.program_id(2)
    n_e = pl.num_programs(1)
    n_c = pl.num_programs(2)

    @pl.when(jnp.logical_and(e == 0, c == 0))
    def _():
        acc_ref[...] = jnp.zeros_like(acc_ref)

    @pl.when(c == 0)
    def _():
        # fc1 + relu once per (batch tile, expert); h1 stays resident in VMEM
        # across the hidden-chunk sweep.
        h1 = jnp.dot(x_ref[...], w1_ref[0],
                     preferred_element_type=jnp.float32) + b1_ref[0]
        h1_ref[...] = jnp.maximum(h1, 0.0).astype(jnp.bfloat16)
        # gate-scaled fc3 bias added exactly once per expert
        acc_ref[...] += g_ref[0] * b3_ref[0]

    # fc2 chunk (this chunk's hidden columns) + relu; gate folded into bf16 cast.
    h2c = jnp.dot(h1_ref[...], w2_ref[0],
                  preferred_element_type=jnp.float32) + b2_ref[0]
    h2c = (jnp.maximum(h2c, 0.0) * g_ref[0]).astype(jnp.bfloat16)
    # fc3 partial product (matching w3 row chunk) into the resident f32 accumulator.
    acc_ref[...] += jnp.dot(h2c, w3_ref[0], preferred_element_type=jnp.float32)

    @pl.when(jnp.logical_and(e == n_e - 1, c == n_c - 1))
    def _():
        o_ref[...] = acc_ref[...].astype(o_ref.dtype)


def moe_forward(x, params, *, batch_tile=512, hidden_chunk=512,
                lane_multiple=128, out_dtype=jnp.float32):
    """x: [B, input_dim] float32. params: dict of stacked weights (see init_params).

    lane_multiple: 128 in general; 256 recommended on v6e (matches 2x256^2 MXU).
    out_dtype: jnp.bfloat16 halves output HBM writeback if acceptable downstream.
    """
    B, D_in = x.shape
    E, _, H = params["w1"].shape
    D_out = params["w3"].shape[-1]

    # ---- gating network in the XLA wrapper (tiny MLP; f32) --------------------
    hg = jax.nn.relu(x @ params["gw1"] + params["gb1"])
    gates = jax.nn.softmax(hg @ params["gw2"] + params["gb2"], axis=1)   # (B, E) f32

    # ---- tile plan -------------------------------------------------------------
    Bp16 = _round_up(B, 16)                 # bf16 sublane pack is 16 rows
    n_b = _cdiv(Bp16, batch_tile)
    TB = _round_up(_cdiv(Bp16, n_b), 16)    # as large as the cap allows
    Bp = TB * n_b

    Dip = _round_up(D_in, lane_multiple)
    Hp = _round_up(H, lane_multiple)
    Dop = _round_up(D_out, lane_multiple)
    tn2 = _pick_hidden_chunk(Hp, hidden_chunk)
    n_c = Hp // tn2

    # ---- pad to lane/sublane-friendly shapes (zero padding is exact) ----------
    xp = jnp.zeros((Bp, Dip), jnp.bfloat16).at[:B, :D_in].set(x.astype(jnp.bfloat16))
    gp = jnp.zeros((E, Bp, 1), jnp.float32).at[:, :B, 0].set(gates.T)

    def pad_w(w, d0, d1):
        return (jnp.zeros((E, d0, d1), jnp.bfloat16)
                .at[:, :w.shape[1], :w.shape[2]].set(w.astype(jnp.bfloat16)))

    def pad_b(b, d1):
        return jnp.zeros((E, 1, d1), jnp.float32).at[:, :, :b.shape[2]].set(b)

    w1 = pad_w(params["w1"], Dip, Hp)
    b1 = pad_b(params["b1"], Hp)
    w2 = pad_w(params["w2"], Hp, Hp)
    b2 = pad_b(params["b2"], Hp)
    w3 = pad_w(params["w3"], Hp, Dop)
    b3 = pad_b(params["b3"], Dop)

    # ---- VMEM budget: double-buffered inputs + out block + scratch ------------
    ob = jnp.dtype(out_dtype).itemsize
    est = (2 * TB * 4                      # gates block
           + 2 * TB * Dip * 2              # x block (bf16)
           + 2 * Dip * Hp * 2              # fc1 W block
           + 2 * Hp * 4                    # fc1 b
           + 2 * Hp * tn2 * 2              # fc2 W chunk
           + 2 * tn2 * 4                   # fc2 b chunk
           + 2 * tn2 * Dop * 2             # fc3 W chunk
           + 2 * Dop * 4                   # fc3 b
           + 2 * TB * Dop * ob             # out block
           + TB * Dop * 4                  # acc scratch (f32)
           + TB * Hp * 2)                  # h1 scratch (bf16)
    try:
        phys_vmem = int(pltpu.get_tpu_info().vmem_capacity_bytes)
    except Exception:
        phys_vmem = 64 * 2 ** 20           # v7x per-TC is the smallest generation
    vmem_limit = int(min(max(est * 1.25 + (1 << 20), 32 * 2 ** 20),
                         phys_vmem - 2 * 2 ** 20))

    grid = (n_b, E, n_c)   # batch tiles outer ("parallel"), experts / chunks inner

    out = pl.pallas_call(
        moe_expert_kernel,
        out_shape=jax.ShapeDtypeStruct((Bp, Dop), out_dtype),
        grid_spec=pltpu.PrefetchScalarGridSpec(
            num_scalar_prefetch=0,
            grid=grid,
            in_specs=[
                pl.BlockSpec((1, TB, 1), lambda b, e, c: (e, b, 0)),      # gates  [E,Bp,1]
                pl.BlockSpec((TB, Dip), lambda b, e, c: (b, 0)),          # x      [Bp,Dip]
                pl.BlockSpec((1, Dip, Hp), lambda b, e, c: (e, 0, 0)),    # fc1 W  [E,Dip,Hp]
                pl.BlockSpec((1, 1, Hp), lambda b, e, c: (e, 0, 0)),      # fc1 b  [E,1,Hp]
                pl.BlockSpec((1, Hp, tn2), lambda b, e, c: (e, 0, c)),    # fc2 W  col chunk
                pl.BlockSpec((1, 1, tn2), lambda b, e, c: (e, 0, c)),     # fc2 b  chunk
                pl.BlockSpec((1, tn2, Dop), lambda b, e, c: (e, c, 0)),   # fc3 W  row chunk
                pl.BlockSpec((1, 1, Dop), lambda b, e, c: (e, 0, 0)),     # fc3 b  [E,1,Dop]
            ],
            out_specs=pl.BlockSpec((TB, Dop), lambda b, e, c: (b, 0)),
            scratch_shapes=[pltpu.VMEM((TB, Dop), jnp.float32),           # acc
                            pltpu.VMEM((TB, Hp), jnp.bfloat16)],          # h1
        ),
        compiler_params=pltpu.CompilerParams(
            dimension_semantics=("parallel", "arbitrary", "arbitrary"),
            vmem_limit_bytes=vmem_limit),
    )(gp, xp, w1, b1, w2, b2, w3, b3)

    return out[:B, :D_out]


def init_params(key, num_experts, input_dim, hidden_dim, output_dim, gate_hidden=64):
    ks = jax.random.split(key, 10)
    s = 0.1
    return {
        "gw1": s * jax.random.normal(ks[0], (input_dim, gate_hidden), jnp.float32),
        "gb1": s * jax.random.normal(ks[1], (1, gate_hidden), jnp.float32),
        "gw2": s * jax.random.normal(ks[2], (gate_hidden, num_experts), jnp.float32),
        "gb2": s * jax.random.normal(ks[3], (1, num_experts), jnp.float32),
        "w1":  s * jax.random.normal(ks[4], (num_experts, input_dim, hidden_dim), jnp.float32),
        "b1":  s * jax.random.normal(ks[5], (num_experts, 1, hidden_dim), jnp.float32),
        "w2":  s * jax.random.normal(ks[6], (num_experts, hidden_dim, hidden_dim), jnp.float32),
        "b2":  s * jax.random.normal(ks[7], (num_experts, 1, hidden_dim), jnp.float32),
        "w3":  s * jax.random.normal(ks[8], (num_experts, hidden_dim, output_dim), jnp.float32),
        "b3":  s * jax.random.normal(ks[9], (num_experts, 1, output_dim), jnp.float32),
    }


def moe_reference(x, p):
    """Pure-JAX f32 reference mirroring the PyTorch dense forward (eval mode)."""
    h = jax.nn.relu(x @ p["gw1"] + p["gb1"])
    gates = jax.nn.softmax(h @ p["gw2"] + p["gb2"], axis=1)
    E = p["w1"].shape[0]
    out = jnp.zeros((x.shape[0], p["w3"].shape[-1]), jnp.float32)
    for i in range(E):
        h1 = jax.nn.relu(x @ p["w1"][i] + p["b1"][i])
        h2 = jax.nn.relu(h1 @ p["w2"][i] + p["b2"][i])
        eo = h2 @ p["w3"][i] + p["b3"][i]
        out = out + eo * gates[:, i:i + 1]
    return out


if __name__ == "__main__":
    num_experts, input_dim, hidden_dim, output_dim = 4, 16, 32, 8
    batch = 8

    key = jax.random.PRNGKey(0)
    kx, kp = jax.random.split(key)
    x = jax.random.normal(kx, (batch, input_dim), jnp.float32)
    params = init_params(kp, num_experts, input_dim, hidden_dim, output_dim)

    out = jax.jit(moe_forward)(x, params)
    out = jax.block_until_ready(out)

    ref = moe_reference(x, params)
    assert out.shape == (batch, output_dim)
    # bf16 weights/activations with f32 accumulation -> small numeric drift vs f32 ref
    assert jnp.allclose(out, ref, atol=2e-2, rtol=2e-2), "mismatch vs reference"

    print("KERNEL_OK")
</pallas_src>

<mosaic_0001>
module attributes {stable_mosaic.version = 11 : i64} {
  func.func @moe_expert_kernel(%arg0: i32, %arg1: i32, %arg2: i32, %arg3: memref<1x16x1xf32, #tpu.memory_space<vmem>>, %arg4: memref<16x128xbf16, #tpu.memory_space<vmem>>, %arg5: memref<1x128x128xbf16, #tpu.memory_space<vmem>>, %arg6: memref<1x1x128xf32, #tpu.memory_space<vmem>>, %arg7: memref<1x128x128xbf16, #tpu.memory_space<vmem>>, %arg8: memref<1x1x128xf32, #tpu.memory_space<vmem>>, %arg9: memref<1x128x128xbf16, #tpu.memory_space<vmem>>, %arg10: memref<1x1x128xf32, #tpu.memory_space<vmem>>, %arg11: memref<16x128xf32, #tpu.memory_space<vmem>>, %arg12: memref<16x128xf32, #tpu.memory_space<vmem>>, %arg13: memref<16x128xbf16, #tpu.memory_space<vmem>>) attributes {dimension_semantics = [#tpu.dimension_semantics<parallel>, #tpu.dimension_semantics<arbitrary>, #tpu.dimension_semantics<arbitrary>], iteration_bounds = array<i64: 1, 4, 1>, scalar_prefetch = 0 : i64, scratch_operands = 2 : i64, tpu.core_type = #tpu.core_type<tc>, window_params = [{transform_indices = @transform_0, window_bounds = array<i64: 1, 16, 1>}, {transform_indices = @transform_1, window_bounds = array<i64: 16, 128>}, {transform_indices = @transform_2, window_bounds = array<i64: 1, 128, 128>}, {transform_indices = @transform_3, window_bounds = array<i64: 1, 1, 128>}, {transform_indices = @transform_4, window_bounds = array<i64: 1, 128, 128>}, {transform_indices = @transform_5, window_bounds = array<i64: 1, 1, 128>}, {transform_indices = @transform_6, window_bounds = array<i64: 1, 128, 128>}, {transform_indices = @transform_7, window_bounds = array<i64: 1, 1, 128>}, {transform_indices = @transform_8, window_bounds = array<i64: 16, 128>}]} {
    %c0_i32 = arith.constant 0 : i32
    %0 = arith.cmpi eq, %arg1, %c0_i32 : i32
    %c0_i32_0 = arith.constant 0 : i32
    %1 = arith.cmpi eq, %arg2, %c0_i32_0 : i32
    %2 = arith.andi %0, %1 : i1
    %3 = arith.extui %2 : i1 to i32
    %c0_i32_1 = arith.constant 0 : i32
    %4 = arith.cmpi ne, %3, %c0_i32_1 : i32
    scf.if %4 {
      %cst_25 = arith.constant 0.000000e+00 : f32
      %34 = vector.broadcast %cst_25 : f32 to vector<16x128xf32>
      %c0_26 = arith.constant 0 : index
      %c0_27 = arith.constant 0 : index
      %35 = vector.load %arg12[%c0_26, %c0_27] : memref<16x128xf32, #tpu.memory_space<vmem>>, vector<16x128xf32>
      tpu.vector_store %arg12[%c0_26, %c0_27], %34 {strides = array<i32>} : memref<16x128xf32, #tpu.memory_space<vmem>>, vector<16x128xf32>,
    } else {
    }
    %c0_i32_2 = arith.constant 0 : i32
    %5 = arith.cmpi eq, %arg2, %c0_i32_2 : i32
    %6 = arith.extui %5 : i1 to i32
    %c0_i32_3 = arith.constant 0 : i32
    %7 = arith.cmpi ne, %6, %c0_i32_3 : i32
    scf.if %7 {
      %c0_25 = arith.constant 0 : index
      %c0_26 = arith.constant 0 : index
      %34 = vector.load %arg4[%c0_25, %c0_26] : memref<16x128xbf16, #tpu.memory_space<vmem>>, vector<16x128xbf16>
      %c0_27 = arith.constant 0 : index
      %c0_28 = arith.constant 0 : index
      %c0_29 = arith.constant 0 : index
      %35 = vector.load %arg5[%c0_27, %c0_28, %c0_29] : memref<1x128x128xbf16, #tpu.memory_space<vmem>>, vector<1x128x128xbf16>
      %36 = vector.shape_cast %35 : vector<1x128x128xbf16> to vector<128x128xbf16>
      %cst_30 = arith.constant dense<0.000000e+00> : vector<16x128xf32>
      %37 = tpu.matmul %34, %36, %cst_30 {dimension_numbers = #tpu.dot_dimension_numbers<[1], [0], [0], [1], [0, 0, 1, 1], [], []>} : vector<16x128xbf16>, vector<128x128xbf16>, vector<16x128xf32> -> vector<16x128xf32>
      %c0_31 = arith.constant 0 : index
      %c0_32 = arith.constant 0 : index
      %c0_33 = arith.constant 0 : index
      %38 = vector.load %arg6[%c0_31, %c0_32, %c0_33] : memref<1x1x128xf32, #tpu.memory_space<vmem>>, vector<1x1x128xf32>
      %39 = vector.shape_cast %38 : vector<1x1x128xf32> to vector<1x128xf32>
      %40 = vector.broadcast %39 : vector<1x128xf32> to vector<16x128xf32>
      %41 = arith.addf %37, %40 : vector<16x128xf32>
      %cst_34 = arith.constant 0.000000e+00 : f32
      %42 = vector.broadcast %cst_34 : f32 to vector<16x128xf32>
      %43 = arith.maximumf %41, %42 : vector<16x128xf32>
      %44 = arith.truncf %43 : vector<16x128xf32> to vector<16x128xbf16>
      %c0_35 = arith.constant 0 : index
      %c0_36 = arith.constant 0 : index
      %45 = vector.load %arg13[%c0_35, %c0_36] : memref<16x128xbf16, #tpu.memory_space<vmem>>, vector<16x128xbf16>
      tpu.vector_store %arg13[%c0_35, %c0_36], %44 {strides = array<i32>} : memref<16x128xbf16, #tpu.memory_space<vmem>>, vector<16x128xbf16>,
      %c0_37 = arith.constant 0 : index
      %c0_38 = arith.constant 0 : index
      %46 = vector.load %arg12[%c0_37, %c0_38] : memref<16x128xf32, #tpu.memory_space<vmem>>, vector<16x128xf32>
      %c0_39 = arith.constant 0 : index
      %c0_40 = arith.constant 0 : index
      %c0_41 = arith.constant 0 : index
      %47 = vector.load %arg3[%c0_39, %c0_40, %c0_41] : memref<1x16x1xf32, #tpu.memory_space<vmem>>, vector<1x16x1xf32>
      %48 = vector.shape_cast %47 : vector<1x16x1xf32> to vector<16x1xf32>
      %c0_42 = arith.constant 0 : index
      %c0_43 = arith.constant 0 : index
      %c0_44 = arith.constant 0 : index
      %49 = vector.load %arg10[%c0_42, %c0_43, %c0_44] : memref<1x1x128xf32, #tpu.memory_space<vmem>>, vector<1x1x128xf32>
      %50 = vector.shape_cast %49 : vector<1x1x128xf32> to vector<1x128xf32>
      %51 = vector.broadcast %48 : vector<16x1xf32> to vector<16x128xf32>
      %52 = vector.broadcast %50 : vector<1x128xf32> to vector<16x128xf32>
      %53 = arith.mulf %51, %52 : vector<16x128xf32>
      %54 = arith.addf %46, %53 : vector<16x128xf32>
      %c0_45 = arith.constant 0 : index
      %c0_46 = arith.constant 0 : index
      %55 = vector.load %arg12[%c0_45, %c0_46] : memref<16x128xf32, #tpu.memory_space<vmem>>, vector<16x128xf32>
      tpu.vector_store %arg12[%c0_45, %c0_46], %54 {strides = array<i32>} : memref<16x128xf32, #tpu.memory_space<vmem>>, vector<16x128xf32>,
    } else {
    }
    %c0 = arith.constant 0 : index
    %c0_4 = arith.constant 0 : index
    %8 = vector.load %arg13[%c0, %c0_4] : memref<16x128xbf16, #tpu.memory_space<vmem>>, vector<16x128xbf16>
    %c0_5 = arith.constant 0 : index
    %c0_6 = arith.constant 0 : index
    %c0_7 = arith.constant 0 : index
    %9 = vector.load %arg7[%c0_5, %c0_6, %c0_7] : memref<1x128x128xbf16, #tpu.memory_space<vmem>>, vector<1x128x128xbf16>
    %10 = vector.shape_cast %9 : vector<1x128x128xbf16> to vector<128x128xbf16>
    %cst = arith.constant dense<0.000000e+00> : vector<16x128xf32>
    %11 = tpu.matmul %8, %10, %cst {dimension_numbers = #tpu.dot_dimension_numbers<[1], [0], [0], [1], [0, 0, 1, 1], [], []>} : vector<16x128xbf16>, vector<128x128xbf16>, vector<16x128xf32> -> vector<16x128xf32>
    %c0_8 = arith.constant 0 : index
    %c0_9 = arith.constant 0 : index
    %c0_10 = arith.constant 0 : index
    %12 = vector.load %arg8[%c0_8, %c0_9, %c0_10] : memref<1x1x128xf32, #tpu.memory_space<vmem>>, vector<1x1x128xf32>
    %13 = vector.shape_cast %12 : vector<1x1x128xf32> to vector<1x128xf32>
    %14 = vector.broadcast %13 : vector<1x128xf32> to vector<16x128xf32>
    %15 = arith.addf %11, %14 : vector<16x128xf32>
    %cst_11 = arith.constant 0.000000e+00 : f32
    %16 = vector.broadcast %cst_11 : f32 to vector<16x128xf32>
    %17 = arith.maximumf %15, %16 : vector<16x128xf32>
    %c0_12 = arith.constant 0 : index
    %c0_13 = arith.constant 0 : index
    %c0_14 = arith.constant 0 : index
    %18 = vector.load %arg3[%c0_12, %c0_13, %c0_14] : memref<1x16x1xf32, #tpu.memory_space<vmem>>, vector<1x16x1xf32>
    %19 = vector.shape_cast %18 : vector<1x16x1xf32> to vector<16x1xf32>
    %20 = vector.broadcast %19 : vector<16x1xf32> to vector<16x128xf32>
    %21 = arith.mulf %17, %20 : vector<16x128xf32>
    %22 = arith.truncf %21 : vector<16x128xf32> to vector<16x128xbf16>
    %c0_15 = arith.constant 0 : index
    %c0_16 = arith.constant 0 : index
    %23 = vector.load %arg12[%c0_15, %c0_16] : memref<16x128xf32, #tpu.memory_space<vmem>>, vector<16x128xf32>
    %c0_17 = arith.constant 0 : index
    %c0_18 = arith.constant 0 : index
    %c0_19 = arith.constant 0 : index
    %24 = vector.load %arg9[%c0_17, %c0_18, %c0_19] : memref<1x128x128xbf16, #tpu.memory_space<vmem>>, vector<1x128x128xbf16>
    %25 = vector.shape_cast %24 : vector<1x128x128xbf16> to vector<128x128xbf16>
    %cst_20 = arith.constant dense<0.000000e+00> : vector<16x128xf32>
    %26 = tpu.matmul %22, %25, %cst_20 {dimension_numbers = #tpu.dot_dimension_numbers<[1], [0], [0], [1], [0, 0, 1, 1], [], []>} : vector<16x128xbf16>, vector<128x128xbf16>, vector<16x128xf32> -> vector<16x128xf32>
    %27 = arith.addf %23, %26 : vector<16x128xf32>
    %c0_21 = arith.constant 0 : index
    %c0_22 = arith.constant 0 : index
    %28 = vector.load %arg12[%c0_21, %c0_22] : memref<16x128xf32, #tpu.memory_space<vmem>>, vector<16x128xf32>
    tpu.vector_store %arg12[%c0_21, %c0_22], %27 {strides = array<i32>} : memref<16x128xf32, #tpu.memory_space<vmem>>, vector<16x128xf32>,
    %c3_i32 = arith.constant 3 : i32
    %29 = arith.cmpi eq, %arg1, %c3_i32 : i32
    %c0_i32_23 = arith.constant 0 : i32
    %30 = arith.cmpi eq, %arg2, %c0_i32_23 : i32
    %31 = arith.andi %29, %30 : i1
    %32 = arith.extui %31 : i1 to i32
    %c0_i32_24 = arith.constant 0 : i32
    %33 = arith.cmpi ne, %32, %c0_i32_24 : i32
    scf.if %33 {
      %c0_25 = arith.constant 0 : index
      %c0_26 = arith.constant 0 : index
      %34 = vector.load %arg12[%c0_25, %c0_26] : memref<16x128xf32, #tpu.memory_space<vmem>>, vector<16x128xf32>
      %c0_27 = arith.constant 0 : index
      %c0_28 = arith.constant 0 : index
      %35 = vector.load %arg11[%c0_27, %c0_28] : memref<16x128xf32, #tpu.memory_space<vmem>>, vector<16x128xf32>
      tpu.vector_store %arg11[%c0_27, %c0_28], %34 {strides = array<i32>} : memref<16x128xf32, #tpu.memory_space<vmem>>, vector<16x128xf32>,
    } else {
    }
    return
  }
  func.func @transform_0(%arg0: i32, %arg1: i32, %arg2: i32) -> (i32, i32, i32) {
    %c0_i32 = arith.constant 0 : i32
    %c0_i32_0 = arith.constant 0 : i32
    return %arg1, %arg0, %c0_i32 : i32, i32, i32
  }
  func.func @transform_1(%arg0: i32, %arg1: i32, %arg2: i32) -> (i32, i32) {
    %c0_i32 = arith.constant 0 : i32
    %c0_i32_0 = arith.constant 0 : i32
    return %arg0, %c0_i32 : i32, i32
  }
  func.func @transform_2(%arg0: i32, %arg1: i32, %arg2: i32) -> (i32, i32, i32) {
    %c0_i32 = arith.constant 0 : i32
    %c0_i32_0 = arith.constant 0 : i32
    %c0_i32_1 = arith.constant 0 : i32
    return %arg1, %c0_i32, %c0_i32_0 : i32, i32, i32
  }
  func.func @transform_3(%arg0: i32, %arg1: i32, %arg2: i32) -> (i32, i32, i32) {
    %c0_i32 = arith.constant 0 : i32
    %c0_i32_0 = arith.constant 0 : i32
    %c0_i32_1 = arith.constant 0 : i32
    return %arg1, %c0_i32, %c0_i32_0 : i32, i32, i32
  }
  func.func @transform_4(%arg0: i32, %arg1: i32, %arg2: i32) -> (i32, i32, i32) {
    %c0_i32 = arith.constant 0 : i32
    %c0_i32_0 = arith.constant 0 : i32
    return %arg1, %c0_i32, %arg2 : i32, i32, i32
  }
  func.func @transform_5(%arg0: i32, %arg1: i32, %arg2: i32) -> (i32, i32, i32) {
    %c0_i32 = arith.constant 0 : i32
    %c0_i32_0 = arith.constant 0 : i32
    return %arg1, %c0_i32, %arg2 : i32, i32, i32
  }
  func.func @transform_6(%arg0: i32, %arg1: i32, %arg2: i32) -> (i32, i32, i32) {
    %c0_i32 = arith.constant 0 : i32
    %c0_i32_0 = arith.constant 0 : i32
    return %arg1, %arg2, %c0_i32 : i32, i32, i32
  }
  func.func @transform_7(%arg0: i32, %arg1: i32, %arg2: i32) -> (i32, i32, i32) {
    %c0_i32 = arith.constant 0 : i32
    %c0_i32_0 = arith.constant 0 : i32
    %c0_i32_1 = arith.constant 0 : i32
    return %arg1, %c0_i32, %c0_i32_0 : i32, i32, i32
  }
  func.func @transform_8(%arg0: i32, %arg1: i32, %arg2: i32) -> (i32, i32) {
    %c0_i32 = arith.constant 0 : i32
    %c0_i32_0 = arith.constant 0 : i32
    return %arg0, %c0_i32 : i32, i32
  }
}

</mosaic_0001>

<bundles_post_ra>
// kernel: moe_forward.1
= control target key start
LH: loop header
LB: loop body
LE: loop exit
PB: predicated region body
PF: predicated region fallthrough
CT: control target
= control target key end

     0   :  { %s1349_s27 = smov 0   ;;  %s1351_s28 = smov 0   ;;  %s1500_s0 = inlined_call_operand.vmem [shape: f32[4,16,1], index: 0, kind: input, shape index: {}]   ;;  %s1501_s1 = inlined_call_operand.vmem [shape: bf16[16,128], index: 1, kind: input, shape index: {}]   ;;  %s1502_s2 = inlined_call_operand.vmem [shape: bf16[4,128,128], index: 2, kind: input, shape index: {}]   ;;  %s1503_s3 = inlined_call_operand.vmem [shape: f32[4,1,128], index: 3, kind: input, shape index: {}]   ;;  %s1504_s4 = inlined_call_operand.vmem [shape: bf16[4,128,128], index: 4, kind: input, shape index: {}]   ;;  %s1505_s5 = inlined_call_operand.vmem [shape: f32[4,1,128], index: 5, kind: input, shape index: {}]   ;;  %s1506_s6 = inlined_call_operand.vmem [shape: bf16[4,128,128], index: 6, kind: input, shape index: {}]   ;;  %s1507_s7 = inlined_call_operand.vmem [shape: f32[4,1,128], index: 7, kind: input, shape index: {}]   ;;  %s1508_s8 = inlined_call_operand.vmem [shape: f32[16,128], index: 8, kind: output, shape index: {}]  }
   0x1   :  { %1509 = sst [smem:[#allocation4_spill]] %s1500_s0  ;;  %s1353_s29 = smov 0  }
   0x2 LB: > { %s33_s30 = sadd.s32 1, %s1294_s28  ;;  %p1085_p0 = scmp.ge.s32.totalorder %s1298_s29, 1  ;;  %s1298_s29 = sphi %s1353_s29, %s18_s29   ;;  %s1294_s28 = sphi %s1351_s28, %s1512_s28   ;;  %s1290_s27 = sphi %s1349_s27, %s1511_s27  }
   0x3   : > { %p35_p1 = scmp.ge.s32.totalorder %s33_s30, 4  ;;  %p370_p2 = scmp.lt.s32.totalorder %s1298_s29, 5 }
   0x5   : > { %s1514_s30 = smov (%p35_p1, %s33_s30), 0  ;;  %p371_p3 = pnand %p1085_p0, %p370_p2 }
   0x6   : > { %p448_p4 = scmp.lt.s32.totalorder (!%p371_p3), %s1290_s27, 3  ;;  %p505_p5 = scmp.eq.s32.totalorder (!%p371_p3), %s1290_s27, 0 }
   0x7   : > { %374 = sbr.rel (%p371_p3) target bundleno = 722 (0x2d2), region = 52  ;;  %s1510_s0 = sld [smem:[#allocation4_spill]] (!%p371_p3) }
   0xe   : > { %s1372_s9 = scalar_select %p448_p4, %s1290_s27, 3 }
   0xf   : > { %510 = sbr.rel (!%p505_p5) target bundleno = 22 (0x16), region = 56  ;;  %v1300_v0 = vmov (%p505_p5), 0.0  }
  0x10   : > { %s1128_s10 = sshll.u32 %s1372_s9, 4  ;;  %s1129_s11 = sshll.u32 %s1372_s9, 6  ;;  %511 = vst [vmem:[#allocation2] sm:$0xff] (%p505_p5), %v1300_v0  ;;  %512 = vst [vmem:[#allocation2 + $0x8] sm:$0xff] (%p505_p5), %v1300_v0 }
  0x11   : > { %s1379_s14 = scalar_lea.vmem %s1510_s0, %s1128_s10  ;;  %s1384_s17 = scalar_lea.vmem %s1502_s2, %s1129_s11 }
  0x12   : > { %s470_s20 = scalar_lea.vmem %s1503_s3, %s1372_s9  ;;  %s1393_s23 = scalar_lea.vmem %s1504_s4, %s1129_s11 }
  0x13   : > { %s484_s26 = scalar_lea.vmem %s1505_s5, %s1372_s9  ;;  %s1402_s13 = scalar_lea.vmem %s1506_s6, %s1129_s11 }
  0x14   : > { %s497_s0 = scalar_lea.vmem %s1507_s7, %s1372_s9 }
  0x16 PF: > { %v1251_v1 = vld [vmem:[%s1384_s17] sm:$0xff]   ;;  %v1301_v2 = vmov 0.0   ;;  %v1252_v3 = vld [vmem:[%s1384_s17 + $0x8] sm:$0xff]   ;;  %vm1302_vm0 = vmmov 0   ;;  %v1253_v4 = vld [vmem:[%s1384_s17 + $0x10] sm:$0xff]   ;;  %v1303_v21 = vmov 0  }
  0x17   : > { %1161 = vmatprep.subr.bf16.mxu0 %v1301_v2  ;;  %1181 = vmatprep.subr.bf16.mxu1 %v1301_v2  ;;  %v1260_v5 = vld [vmem:[%s1393_s23] sm:$0xff]   ;;  %v1254_v6 = vld [vmem:[%s1384_s17 + $0x18] sm:$0xff]   ;;  %v1261_v7 = vld [vmem:[%s1393_s23 + $0x8] sm:$0xff]   ;;  %p908_p6 = scmp.eq.s32.totalorder %s1290_s27, 3 }
  0x18   : > { %1162 = vmatpush3.bf16.msra.mxu0 %v1251_v1  ;;  %1177 = vmatprep.mubr.msk.bf16.mxu0 %vm1302_vm0, %v1301_v2  ;;  %v1255_v8 = vld [vmem:[%s1384_s17 + $0x20] sm:$0xff]   ;;  %v1262_v9 = vld [vmem:[%s1393_s23 + $0x10] sm:$0xff]   ;;  %v1256_v10 = vld [vmem:[%s1384_s17 + $0x28] sm:$0xff]  }
  0x19   : > { %1163 = vmatprep.subr.bf16.mxu0 %v1301_v2  ;;  %1197 = vmatprep.mubr.msk.bf16.mxu1 %vm1302_vm0, %v1301_v2  ;;  %v1263_v11 = vld [vmem:[%s1393_s23 + $0x18] sm:$0xff]   ;;  %v1257_v12 = vld [vmem:[%s1384_s17 + $0x30] sm:$0xff]   ;;  %v1264_v13 = vld [vmem:[%s1393_s23 + $0x20] sm:$0xff]  }
  0x1a   : > { %1182 = vmatpush3.bf16.msra.mxu1 %v1260_v5  ;;  %v1258_v14 = vld [vmem:[%s1384_s17 + $0x38] sm:$0xff]   ;;  %v1265_v15 = vld [vmem:[%s1393_s23 + $0x28] sm:$0xff]   ;;  %v1259_v16 = vld [vmem:[%s1501_s1] sm:$0xff]   ;;  %1249 = vset.pattern.permute.xlu0 %v1303_v21 }
  0x1b   : > { %1183 = vmatprep.subr.bf16.mxu1 %v1301_v2  ;;  %v1266_v17 = vld [vmem:[%s1393_s23 + $0x30] sm:$0xff]   ;;  %v1267_v18 = vld [vmem:[%s1393_s23 + $0x38] sm:$0xff]   ;;  %v782_v19 = vld [vmem:[%s1379_s14] sm:$0xff]  ;;  %1250 = vset.pattern.permute.xlu1 %v1303_v21 }
  0x1c   : > { %1164 = vmatpush3.bf16.msra.mxu0 %v1252_v3  ;;  %v1268_v20 = vld [vmem:[%s1402_s13] sm:$0xff]   ;;  %786 = vperm.xlu0 %1249, %v782_v19   ;;  %v1269_v22 = vld [vmem:[%s1402_s13 + $0x8] sm:$0xff]   ;;  %v1270_v24 = vld [vmem:[%s1402_s13 + $0x10] sm:$0xff]  }
  0x1d   : > { %1165 = vmatprep.subr.bf16.mxu0 %v1301_v2  ;;  %v783_v23 = vld [vmem:[%s1379_s14 + $0x8] sm:$0xff]  ;;  %647 = vperm.xlu1 %1250, %v782_v19   ;;  %v1271_v25 = vld [vmem:[%s1402_s13 + $0x18] sm:$0xff]   ;;  %v1272_v26 = vld [vmem:[%s1402_s13 + $0x20] sm:$0xff]  }
  0x1e   : > { %1184 = vmatpush3.bf16.msra.mxu1 %v1261_v7  ;;  %v1095_v27 = vld [vmem:[%s470_s20] ss:$0 sm:$0xff]  ;;  %v1273_v37 = vld [vmem:[%s1402_s13 + $0x28] sm:$0xff]   ;;  %v1274_v38 = vld [vmem:[%s1402_s13 + $0x30] sm:$0xff]  }
  0x1f   : > { %1185 = vmatprep.subr.bf16.mxu1 %v1301_v2  ;;  %v1275_v39 = vld [vmem:[%s1402_s13 + $0x38] sm:$0xff]   ;;  %v1106_v40 = vld [vmem:[%s484_s26] ss:$0 sm:$0xff]  ;;  %v641_v60 = vld [vmem:[#allocation2 + $0x8] sm:$0xff] }
  0x20   : > { %1166 = vmatpush3.bf16.msra.mxu0 %v1253_v4  ;;  %791 = vperm.xlu0 %1249, %v783_v23   ;;  %v1105_v55 = vld [vmem:[%s497_s0] ss:$0 sm:$0xff] }
  0x21   : > { %1167 = vmatprep.subr.bf16.mxu0 %v1301_v2  ;;  %652 = vperm.xlu1 %1250, %v783_v23   ;;  %v640_v58 = vld [vmem:[#allocation2] sm:$0xff] }
  0x22   : > { %1186 = vmatpush3.bf16.msra.mxu1 %v1262_v9 }
  0x23   : > { %1187 = vmatprep.subr.bf16.mxu1 %v1301_v2 }
  0x24   : > { %1168 = vmatpush3.bf16.msra.mxu0 %v1254_v6 }
  0x25   : > { %1169 = vmatprep.subr.bf16.mxu0 %v1301_v2 }
  0x26   : > { %1188 = vmatpush3.bf16.msra.mxu1 %v1263_v11 }
  0x27   : > { %1189 = vmatprep.subr.bf16.mxu1 %v1301_v2 }
  0x28   : > { %1170 = vmatpush3.bf16.msra.mxu0 %v1255_v8 }
  0x29   : > { %1171 = vmatprep.subr.bf16.mxu0 %v1301_v2 }
  0x2a   : > { %1190 = vmatpush3.bf16.msra.mxu1 %v1264_v13 }
  0x2b   : > { %1191 = vmatprep.subr.bf16.mxu1 %v1301_v2 }
  0x2c   : > { %1172 = vmatpush3.bf16.msra.mxu0 %v1256_v10 }
  0x2d   : > { %1173 = vmatprep.subr.bf16.mxu0 %v1301_v2 }
  0x2e   : > { %1192 = vmatpush3.bf16.msra.mxu1 %v1265_v15 }
  0x2f   : > { %1193 = vmatprep.subr.bf16.mxu1 %v1301_v2 }
  0x30   : > { %1174 = vmatpush3.bf16.msra.mxu0 %v1257_v12 }
  0x31   : > { %1175 = vmatprep.subr.bf16.mxu0 %v1301_v2 }
  0x32   : > { %1194 = vmatpush3.bf16.msra.mxu1 %v1266_v17 }
  0x33   : > { %1195 = vmatprep.subr.bf16.mxu1 %v1301_v2 }
  0x34   : > { %1176 = vmatpush3.bf16.msra.mxu0 %v1258_v14 }
  0x35   : > { %1201 = vmatprep.subr.bf16.mxu0 %v1301_v2 }
  0x36   : > { %1196 = vmatpush3.bf16.msra.mxu1 %v1267_v18 }
  0x37   : > { %1178 = vmatmul.mubr.bf16.vlgmr.msra.gmra.mrb[0].mxu0 %v1259_v16 }
  0x38   : > { %1217 = vmatprep.mubr.msk.bf16.mxu0 %vm1302_vm0, %v1301_v2  ;;  %1202 = vmatpush3.bf16.msra.mxu0 %v1268_v20 }
  0x39   : > { %1203 = vmatprep.subr.bf16.mxu0 %v1301_v2 }
  0x3c   : > { %1204 = vmatpush3.bf16.msra.mxu0 %v1269_v22 }
  0x3d   : > { %1205 = vmatprep.subr.bf16.mxu0 %v1301_v2 }
  0x40   : > { %1206 = vmatpush3.bf16.msra.mxu0 %v1270_v24 }
  0x41   : > { %1207 = vmatprep.subr.bf16.mxu0 %v1301_v2 }
  0x44   : > { %1208 = vmatpush3.bf16.msra.mxu0 %v1271_v25 }
  0x45   : > { %1209 = vmatprep.subr.bf16.mxu0 %v1301_v2 }
  0x48   : > { %1210 = vmatpush3.bf16.msra.mxu0 %v1272_v26 }
  0x49   : > { %1211 = vmatprep.subr.bf16.mxu0 %v1301_v2 }
  0x4c   : > { %1212 = vmatpush3.bf16.msra.mxu0 %v1273_v37 }
  0x4d   : > { %1213 = vmatprep.subr.bf16.mxu0 %v1301_v2 }
  0x50   : > { %1214 = vmatpush3.bf16.msra.mxu0 %v1274_v38 }
  0x51   : > { %1215 = vmatprep.subr.bf16.mxu0 %v1301_v2 }
  0x54   : > { %1216 = vmatpush3.bf16.msra.mxu0 %v1275_v39 }
  0x9b   : > { %v787_v41 = vpop.permute.xlu0 %786 }
  0x9c   : > { %v648_v54 = vpop.permute.xlu1 %647 }
  0x9d   : > { %v661_v57 = vmul.f32 %v1105_v55, %v648_v54 }
  0x9f   : > { %v792_v50 = vpop.permute.xlu0 %791  ;;  %v663_v61 = vadd.f32 %v661_v57, %v640_v58 }
  0xa0   : > { %v653_v56 = vpop.permute.xlu1 %652 }
  0xa1   : > { %v662_v59 = vmul.f32 %v1105_v55, %v653_v56 }
  0xa3   : > { %v664_v63 = vadd.f32 %v662_v59, %v641_v60 }
 0x10a   : > { %v629_v28 = vpop.f32.mrb[0].mxu0 }
 0x10b   : > { %v630_v29 = vadd.f32 %v1095_v27, %v629_v28  ;;  %v1179_v30 = vpop.f32.mrb[1].mxu0 }
 0x10c   : > { %v632_v31 = vpop.f32.mrb[2].mxu0 }
 0x10d   : > { %v633_v32 = vadd.f32 %v1095_v27, %v632_v31  ;;  %v1180_v33 = vpop.f32.mrb[3].mxu0  ;;  %v636_v34 = vmax.f32 %v630_v29, 0.0 }
 0x10f   : > { %v637_v35 = vmax.f32 %v633_v32, 0.0 }
 0x111   : > { %v638_v36 = vpack.c.bf16 %v637_v35, %v636_v34 }
 0x113   : > { %1198 = vmatmul.mubr.bf16.vlgmr.msra.gmra.mrb[0].mxu1 %v638_v36 }
 0x1e6   : > { %v773_v42 = vpop.f32.mrb[0].mxu1 }
 0x1e7   : > { %v774_v43 = vadd.f32 %v1106_v40, %v773_v42  ;;  %v1199_v44 = vpop.f32.mrb[1].mxu1 }
 0x1e8   : > { %v776_v45 = vpop.f32.mrb[2].mxu1 }
 0x1e9   : > { %v780_v46 = vmax.f32 %v774_v43, 0.0  ;;  %v777_v47 = vadd.f32 %v1106_v40, %v776_v45  ;;  %v1200_v48 = vpop.f32.mrb[3].mxu1 }
 0x1eb   : > { %v781_v49 = vmax.f32 %v777_v47, 0.0  ;;  %v794_v51 = vmul.f32 %v787_v41, %v780_v46 }
 0x1ed   : > { %v795_v52 = vmul.f32 %v792_v50, %v781_v49 }
 0x1ef   : > { %v796_v53 = vpack.c.bf16 %v795_v52, %v794_v51 }
 0x1f1   : > { %1218 = vmatmul.mubr.bf16.vlgmr.msra.gmra.mrb[4].mxu0 %v796_v53 }
 0x2c3   : > { %912 = sbr.rel (!%p908_p6) target bundleno = 722 (0x2d2), region = 64 }
 0x2c4   : > { %v897_v62 = vpop.f32.mrb[4].mxu0 }
 0x2c5   : > { %v904_v0 = vadd.f32 %v897_v62, %v663_v61  ;;  %v1219_v1 = vpop.f32.mrb[5].mxu0 }
 0x2c6   : > { %v900_v2 = vpop.f32.mrb[6].mxu0 }
 0x2c7   : > { %906 = vst [vmem:[#allocation2] sm:$0xff] %v904_v0  ;;  %v905_v3 = vadd.f32 %v900_v2, %v664_v63  ;;  %v1220_v4 = vpop.f32.mrb[7].mxu0 }
 0x2c9   : > { %907 = vst [vmem:[#allocation2 + $0x8] sm:$0xff] %v905_v3 }
 0x2ce   : > { %v913_v5 = vld [vmem:[#allocation2] sm:$0xff] }
 0x2cf   : > { %915 = vst [vmem:[%s1508_s8] sm:$0xff] %v913_v5 }
 0x2d0   : > { %v914_v6 = vld [vmem:[#allocation2 + $0x8] sm:$0xff] }
 0x2d1   : > { %916 = vst [vmem:[%s1508_s8 + $0x8] sm:$0xff] %v914_v6 }
 0x2d2 PF: > { %s18_s29 = sadd.s32 1, %s1298_s29   ;;  %s1511_s27 = smov %s1294_s28 }
 0x2d3   : > { %p15_p7 = scmp.ge.s32.totalorder %s18_s29, 6   ;;  %s1512_s28 = smov %s1514_s30 }
 0x2d5   :  { %17 = sbr.rel (!%p15_p7) target bundleno = 2 (0x2), region = 115 }

</bundles_post_ra>
